<compile_context>
chip_gen: v6e
topology: v6e:2x2x1
jax: 0.10.0
libtpu: 0.0.40
codegen_flags: <defaults>
</compile_context>

<pallas_src>
from collections import namedtuple

import numpy as np
import jax
import jax.numpy as jnp
from jax.experimental import pallas as pl
from jax.experimental.pallas import tpu as pltpu

ORDERS = ['back', 'down', 'front', 'left', 'right', 'top']
RELATION = {
    'back':  ['top-up_yes_yes_no', 'down-down_yes_yes_no', 'right-right_no_no_no', 'left-left_no_no_no'],
    'down':  ['front-down_no_no_no', 'back-down_yes_yes_no', 'left-down_yes_no_yes', 'right-down_no_yes_yes'],
    'front': ['top-down_no_no_no', 'down-up_no_no_no', 'left-right_no_no_no', 'right-left_no_no_no'],
    'left':  ['top-left_yes_no_yes', 'down-left_no_yes_yes', 'back-right_no_no_no', 'front-left_no_no_no'],
    'right': ['top-right_no_yes_yes', 'down-right_yes_no_yes', 'front-right_no_no_no', 'back-left_no_no_no'],
    'top':   ['back-up_yes_yes_no', 'front-up_no_no_no', 'left-up_no_yes_yes', 'right-up_yes_no_yes'],
}
SIDES = ('up', 'down', 'left', 'right')


def _round_up(x, m):
    return ((x + m - 1) // m) * m


# --------------------------------------------------------------------------------------
# Host-side geometry precompute (numpy re-implementation of Equirec2Cube + _GetLoc).
# cv2.Rodrigues is only ever called on pure x- / y-axis rotations -> closed form below.
# --------------------------------------------------------------------------------------
def _rot_y(t):
    c, s = np.cos(t), np.sin(t)
    return np.array([[c, 0.0, s], [0.0, 1.0, 0.0], [-s, 0.0, c]])


def _rot_x(t):
    c, s = np.cos(t), np.sin(t)
    return np.array([[1.0, 0.0, 0.0], [0.0, c, -s], [0.0, s, c]])


def _equirec2cube(out_dim, fov_deg, radius=128.0):
    """Only the pieces SpherePad uses: reordered R_lst, grid_lst, intrinsics."""
    theta_lst = np.array([-90.0, 0.0, 90.0, 180.0]) / 180.0 * np.pi
    phi_lst = np.array([90.0, -90.0]) / 180.0 * np.pi
    R_lst = [_rot_y(t) for t in theta_lst] + [_rot_x(p) for p in phi_lst]

    c_x = (out_dim - 1) / 2.0
    c_y = (out_dim - 1) / 2.0
    wangle = (180.0 - fov_deg) / 2.0
    w_len = 2.0 * radius * np.sin(np.radians(fov_deg / 2.0)) / np.sin(np.radians(wangle))
    f = radius / w_len * out_dim

    interval = w_len / (out_dim - 1)
    z_map = np.zeros((out_dim, out_dim)) + radius
    x_map = np.tile((np.arange(out_dim) - c_x) * interval, [out_dim, 1])
    y_map = np.tile((np.arange(out_dim) - c_y) * interval, [out_dim, 1]).T
    D = np.sqrt(x_map ** 2 + y_map ** 2 + z_map ** 2)
    xyz = np.stack([radius / D * x_map, radius / D * y_map, radius / D * z_map], axis=-1)

    new_lst = [3, 5, 1, 0, 2, 4]
    R_re = [R_lst[i] for i in new_lst]
    grid_lst = []
    with np.errstate(divide='ignore', invalid='ignore'):
        for i in new_lst:
            R = R_lst[i]
            g = (xyz.reshape(-1, 3) @ R.T).reshape(out_dim, out_dim, 3)
            scale = f / g[:, :, 2:3]
            grid_lst.append(g * scale)
    return R_re, grid_lst, {'f': float(f), 'cx': float(c_x), 'cy': float(c_y)}


def _get_loc(R_lst, grid_lst, K, pad):
    """Numpy version of SpherePad._GetLoc: per face/side normalized xy grid + mask."""
    f, cx, cy = K['f'], K['cx'], K['cy']
    K_mat = np.array([[f, 0.0, cx], [0.0, f, cy], [0.0, 0.0, 1.0]])
    grid_front = grid_lst[2]
    out = {}
    for i, face in enumerate(ORDERS):
        out[face] = {}
        for j, side in enumerate(SIDES):
            connected = RELATION[face][j].split('-')[0]
            idx = ORDERS.index(connected)
            R_i2c = R_lst[idx] @ R_lst[i].T
            new_grid = grid_front @ R_i2c.T
            proj = new_grid @ K_mat.T
            with np.errstate(divide='ignore', invalid='ignore'):
                x = proj[..., 0] / proj[..., 2]
                y = proj[..., 1] / proj[..., 2]
            x = (x - cx) / cx
            y = (y - cy) / cy
            mask = (x >= -1.01) & (x <= 1.01) & (y >= -1.01) & (y <= 1.01)
            xy = np.stack([np.clip(x, -1.0, 1.0), np.clip(y, -1.0, 1.0)], axis=-1)
            if side == 'up':
                sl = (slice(0, pad), slice(None))
            elif side == 'down':
                sl = (slice(-pad, None), slice(None))
            elif side == 'left':
                sl = (slice(None), slice(0, pad))
            else:
                sl = (slice(None), slice(-pad, None))
            out[face][side] = {'mask': mask[sl], 'xy': xy[sl]}
    return out


def _sampling_matrix(xy, h, w):
    """Bilinear grid_sample (align_corners=True, zeros padding) as a dense (N, h*w) matrix."""
    pts = xy.reshape(-1, 2)
    n = pts.shape[0]
    S = np.zeros((n, h * w), np.float32)
    with np.errstate(invalid='ignore'):
        ix = (pts[:, 0] + 1.0) * 0.5 * (w - 1)
        iy = (pts[:, 1] + 1.0) * 0.5 * (h - 1)
        ix0 = np.floor(ix)
        iy0 = np.floor(iy)
    for dx in (0, 1):
        for dy in (0, 1):
            xi = ix0 + dx
            yi = iy0 + dy
            wgt = (1.0 - np.abs(ix - xi)) * (1.0 - np.abs(iy - yi))
            valid = (xi >= 0) & (xi < w) & (yi >= 0) & (yi < h) & np.isfinite(wgt)
            nn = np.nonzero(valid)[0]
            cols = yi[nn].astype(np.int64) * w + xi[nn].astype(np.int64)
            np.add.at(S, (nn, cols), wgt[nn].astype(np.float32))
    return S


SpherePadTables = namedtuple(
    "SpherePadTables", ["t_src", "src_of", "slot_of", "strip_len", "pad", "loc"])


def build_sphere_pad_tables(h, w, pad):
    """Source-major fused strip tables.

    For each SOURCE face f, T_src[f] : (h*w, Nf) packs (lane-tight, Nf=round_up(4*L,128))
    the 4 destination strips sampled from that source.  src_of[face, side] / slot_of[...]
    map a destination (face, side) to (source face, slot).  Masks and the up/down-then-
    left/right corner overwrite priority of the reference are folded into the tables, so
    at most one table contributes to any border pixel (asserted below) and plain adds in
    the epilogue are exact.
    """
    assert h == w
    Hp, Wp = h + 2 * pad, w + 2 * pad
    L = pad * Wp                                   # == Hp * pad since h == w
    Nf = _round_up(4 * L, 128)                     # lane-tight fused N, 128-aligned

    theta = 2.0 * np.arctan((0.5 * h + pad) / (0.5 * h))
    _, _, K_ori = _equirec2cube(h, 90.0)
    R_e2c, grid_e2c, _ = _equirec2cube(h + 2 * pad, theta / np.pi * 180.0)
    loc = _get_loc([R.T for R in R_e2c], grid_e2c, K_ori, pad)

    T_src = np.zeros((6, h * w, Nf), np.float32)
    src_of = np.zeros((6, 4), np.int32)
    slot_of = np.zeros((6, 4), np.int32)
    nslots = [0] * 6

    for i, face in enumerate(ORDERS):
        masks = {s: loc[face][s]['mask'] for s in SIDES}
        m_l, m_r = masks['left'], masks['right']          # (Hp, pad)
        cover = np.zeros((Hp, Wp), np.int32)
        cover[:, :pad] += m_l.astype(np.int32)
        cover[:, Wp - pad:] += m_r.astype(np.int32)
        for j, side in enumerate(SIDES):
            src = ORDERS.index(RELATION[face][j].split('-')[0])
            S = _sampling_matrix(loc[face][side]['xy'], h, w)   # (L, h*w)
            keep = masks[side].reshape(-1).copy()
            if side in ('up', 'down'):
                # left/right strips are written later in the reference -> they win corners
                for r2 in range(pad):
                    rr = r2 if side == 'up' else Hp - pad + r2
                    for cc in range(pad):
                        if m_l[rr, cc]:
                            keep[r2 * Wp + cc] = False
                    for c2 in range(pad):
                        if m_r[rr, c2]:
                            keep[r2 * Wp + (Wp - pad + c2)] = False
                rows = slice(0, pad) if side == 'up' else slice(Hp - pad, Hp)
                cover[rows, :] += keep.reshape(pad, Wp).astype(np.int32)
            k = nslots[src]
            nslots[src] += 1
            src_of[i, j] = src
            slot_of[i, j] = k
            T_src[src, :, k * L:(k + 1) * L] = (S * keep[:, None].astype(np.float32)).T
        # invariant the epilogue's plain adds rely on: <=1 strip contributes per pixel
        assert cover.max() <= 1, "border strip tables overlap; corner priority is broken"
    assert all(n == 4 for n in nslots), "source->destination connectivity is not 4-regular"
    return SpherePadTables(T_src, src_of, slot_of, L, pad, loc)


# --------------------------------------------------------------------------------------
# Pallas kernel: one fused strip matmul per (source face, group, c-tile) grid step.
# --------------------------------------------------------------------------------------
def _strip_matmul_kernel(x_ref, t_ref, o_ref):
    # x_ref: (c_tile, h*w) f32   t_ref: (h*w, Nf) f32   o_ref: (c_tile, Nf) out_dtype
    o_ref[...] = jnp.dot(x_ref[...].astype(jnp.float32), t_ref[...],
                         preferred_element_type=jnp.float32).astype(o_ref.dtype)


def _pick_c_tile(c, hw, nf, itemsize=4, budget_bytes=16 * 1024 * 1024):
    """Largest channel tile whose double-buffered blocks (x + T + out) fit the budget."""
    def blk(ct):
        return 2 * itemsize * (ct * hw + hw * nf + ct * nf)
    if blk(c) <= budget_bytes or c % 8 != 0:
        return c                                   # full extent (always BlockSpec-legal)
    for ct in (512, 256, 128, 64, 32, 16, 8):
        if ct < c and c % ct == 0 and blk(ct) <= budget_bytes:
            return ct
    return 8


def sphere_pad_forward(x, tables):
    T_np, src_of, slot_of, L, pad, _ = tables
    bs, c, h, w = x.shape
    assert bs % 6 == 0 and h == w
    G = bs // 6
    Hp, Wp = h + 2 * pad, w + 2 * pad
    hw = h * w
    Nf = T_np.shape[-1]
    out_dtype = x.dtype

    # Free reshape only (batch index = g*6 + f); no face-major transpose of x.
    x4 = x.reshape(G, 6, c, hw)
    T = jnp.asarray(T_np)                          # (6, hw, Nf) f32

    c_tile = _pick_c_tile(c, hw, Nf)
    n_c = c // c_tile if c % c_tile == 0 else 1
    if c % c_tile != 0:
        c_tile, n_c = c, 1

    # Double-buffered block footprint -> VMEM limit (never below the 32 MiB default).
    blk_bytes = 2 * 4 * (hw * Nf) + 2 * c_tile * (hw + Nf) * (x.dtype.itemsize + 4)
    vmem_limit = int(min(100 * 2 ** 20, max(32 * 2 ** 20, int(1.5 * blk_bytes))))

    grid_spec = pltpu.PrefetchScalarGridSpec(
        num_scalar_prefetch=0,
        # face axis OUTERMOST: the T block index is constant across the inner (G, c) axes,
        # so each (large) per-face table is DMA'd exactly once; every x/out block is
        # distinct, so they are read/written exactly once.
        grid=(6, G, n_c),
        in_specs=[
            pl.BlockSpec((None, None, c_tile, hw), lambda f, g, ci: (g, f, ci, 0)),
            pl.BlockSpec((None, hw, Nf), lambda f, g, ci: (f, 0, 0)),
        ],
        out_specs=pl.BlockSpec((None, None, c_tile, Nf), lambda f, g, ci: (g, f, ci, 0)),
    )
    strips = pl.pallas_call(
        _strip_matmul_kernel,
        grid_spec=grid_spec,
        out_shape=jax.ShapeDtypeStruct((G, 6, c, Nf), out_dtype),
        compiler_params=pltpu.CompilerParams(
            dimension_semantics=("parallel", "parallel", "parallel"),
            vmem_limit_bytes=vmem_limit),
    )(x4, T)
    # strips[g, src_face, ch, k*L:(k+1)*L] = border strip of destination (face, side)
    # with src_face = src_of[face, side], k = slot_of[face, side].

    # ---------------- fused epilogue: band-concat assembly, no big transposes ----------
    x5 = x.reshape(G, 6, c, h, w)
    faces = []
    for f in range(6):
        def grab(s):
            src = int(src_of[f, s])
            k = int(slot_of[f, s])
            return strips[:, src, :, k * L:(k + 1) * L]
        up = grab(0).reshape(G, c, pad, Wp)
        down = grab(1).reshape(G, c, pad, Wp)
        left = grab(2).reshape(G, c, Hp, pad)
        right = grab(3).reshape(G, c, Hp, pad)
        # Tables guarantee at most one nonzero contribution per border pixel -> adds exact.
        top = jnp.concatenate([up[..., :pad] + left[..., :pad, :],
                               up[..., pad:pad + w],
                               up[..., Wp - pad:] + right[..., :pad, :]], axis=-1)
        bot = jnp.concatenate([down[..., :pad] + left[..., Hp - pad:, :],
                               down[..., pad:pad + w],
                               down[..., Wp - pad:] + right[..., Hp - pad:, :]], axis=-1)
        mid = jnp.concatenate([left[..., pad:pad + h, :], x5[:, f],
                               right[..., pad:pad + h, :]], axis=-1)
        faces.append(jnp.concatenate([top, mid, bot], axis=-2))     # (G, c, Hp, Wp)

    out = jnp.stack(faces, axis=1)                  # (G, 6, c, Hp, Wp); g*6+f order
    return out.reshape(bs, c, Hp, Wp)


# --------------------------------------------------------------------------------------
# Independent numpy reference of the PyTorch forward (direct gather, not the matrices).
# --------------------------------------------------------------------------------------
def _grid_sample_np(img, xy):
    n, ch, H, W = img.shape
    x = (xy[..., 0] + 1.0) * 0.5 * (W - 1)
    y = (xy[..., 1] + 1.0) * 0.5 * (H - 1)
    x0, y0 = np.floor(x), np.floor(y)
    out = np.zeros((n, ch) + x.shape, np.float64)
    for dx in (0, 1):
        for dy in (0, 1):
            xi, yi = x0 + dx, y0 + dy
            wgt = (1.0 - np.abs(x - xi)) * (1.0 - np.abs(y - yi))
            valid = (xi >= 0) & (xi < W) & (yi >= 0) & (yi < H) & np.isfinite(wgt)
            xi_c = np.clip(np.nan_to_num(xi, nan=0.0), 0, W - 1).astype(np.int64)
            yi_c = np.clip(np.nan_to_num(yi, nan=0.0), 0, H - 1).astype(np.int64)
            out += np.where(valid[None, None], wgt[None, None] * img[:, :, yi_c, xi_c], 0.0)
    return out


def _reference_forward(x_np, pad, loc):
    x_np = x_np.astype(np.float64)
    bs, c, h, w = x_np.shape
    Hp, Wp = h + 2 * pad, w + 2 * pad
    faces_out = []
    for i, face in enumerate(ORDERS):
        tf = x_np[i::6]
        G = tf.shape[0]
        padded = np.zeros((G, c, Hp, Wp), np.float64)
        padded[:, :, pad:pad + h, pad:pad + w] = tf
        for j, side in enumerate(SIDES):
            src = x_np[ORDERS.index(RELATION[face][j].split('-')[0])::6]
            xy, mask = loc[face][side]['xy'], loc[face][side]['mask']
            interp = _grid_sample_np(src, xy)
            if side == 'up':
                region = padded[:, :, :pad, :]
            elif side == 'down':
                region = padded[:, :, -pad:, :]
            elif side == 'left':
                region = padded[:, :, :, :pad]
            else:
                region = padded[:, :, :, -pad:]
            m = np.broadcast_to(mask[None, None], region.shape)
            region[m] = interp[m]
        faces_out.append(padded)
    out = np.concatenate(faces_out, axis=0)
    out = out.reshape(6, bs // 6, c, Hp, Wp).transpose(1, 0, 2, 3, 4).reshape(bs, c, Hp, Wp)
    return out.astype(np.float32)


if __name__ == "__main__":
    pad = 2
    bs, c, h, w = 12, 4, 16, 16          # 2 sample groups x 6 cube faces, NCHW
    key = jax.random.PRNGKey(0)
    x = jax.random.normal(key, (bs, c, h, w), dtype=jnp.float32)

    tables = build_sphere_pad_tables(h, w, pad)
    fwd = jax.jit(lambda xx: sphere_pad_forward(xx, tables))
    out = jax.block_until_ready(fwd(x))

    assert out.shape == (bs, c, h + 2 * pad, w + 2 * pad)
    ref = _reference_forward(np.asarray(x), pad, tables.loc)
    np.testing.assert_allclose(np.asarray(out), ref, rtol=2e-2, atol=2e-2)
    print("KERNEL_OK")
</pallas_src>

<mosaic_0001>
module attributes {stable_mosaic.version = 11 : i64} {
  func.func @_strip_matmul_kernel(%arg0: i32, %arg1: i32, %arg2: i32, %arg3: memref<1x1x4x256xf32, #tpu.memory_space<vmem>>, %arg4: memref<1x256x256xf32, #tpu.memory_space<vmem>>, %arg5: memref<1x1x4x256xf32, #tpu.memory_space<vmem>>) attributes {dimension_semantics = [#tpu.dimension_semantics<parallel>, #tpu.dimension_semantics<parallel>, #tpu.dimension_semantics<parallel>], iteration_bounds = array<i64: 6, 2, 1>, scalar_prefetch = 0 : i64, scratch_operands = 0 : i64, tpu.core_type = #tpu.core_type<tc>, window_params = [{transform_indices = @transform_0, window_bounds = array<i64: 1, 1, 4, 256>}, {transform_indices = @transform_1, window_bounds = array<i64: 1, 256, 256>}, {transform_indices = @transform_2, window_bounds = array<i64: 1, 1, 4, 256>}]} {
    %c0 = arith.constant 0 : index
    %c0_0 = arith.constant 0 : index
    %c0_1 = arith.constant 0 : index
    %c0_2 = arith.constant 0 : index
    %0 = vector.load %arg3[%c0, %c0_0, %c0_1, %c0_2] : memref<1x1x4x256xf32, #tpu.memory_space<vmem>>, vector<1x1x4x256xf32>
    %1 = vector.shape_cast %0 : vector<1x1x4x256xf32> to vector<4x256xf32>
    %c0_3 = arith.constant 0 : index
    %c0_4 = arith.constant 0 : index
    %c0_5 = arith.constant 0 : index
    %2 = vector.load %arg4[%c0_3, %c0_4, %c0_5] : memref<1x256x256xf32, #tpu.memory_space<vmem>>, vector<1x256x256xf32>
    %3 = vector.shape_cast %2 : vector<1x256x256xf32> to vector<256x256xf32>
    %cst = arith.constant dense<0.000000e+00> : vector<4x256xf32>
    %4 = tpu.matmul %1, %3, %cst {dimension_numbers = #tpu.dot_dimension_numbers<[1], [0], [0], [1], [0, 0, 1, 1], [], []>} : vector<4x256xf32>, vector<256x256xf32>, vector<4x256xf32> -> vector<4x256xf32>
    %c0_6 = arith.constant 0 : index
    %c0_7 = arith.constant 0 : index
    %c0_8 = arith.constant 0 : index
    %c0_9 = arith.constant 0 : index
    %5 = vector.load %arg5[%c0_6, %c0_7, %c0_8, %c0_9] : memref<1x1x4x256xf32, #tpu.memory_space<vmem>>, vector<1x1x4x256xf32>
    %6 = vector.shape_cast %5 : vector<1x1x4x256xf32> to vector<4x256xf32>
    %7 = vector.shape_cast %4 : vector<4x256xf32> to vector<1x1x4x256xf32>
    tpu.vector_store %arg5[%c0_6, %c0_7, %c0_8, %c0_9], %7 {strides = array<i32>} : memref<1x1x4x256xf32, #tpu.memory_space<vmem>>, vector<1x1x4x256xf32>,
    return
  }
  func.func @transform_0(%arg0: i32, %arg1: i32, %arg2: i32) -> (i32, i32, i32, i32) {
    %c0_i32 = arith.constant 0 : i32
    %c0_i32_0 = arith.constant 0 : i32
    return %arg1, %arg0, %arg2, %c0_i32 : i32, i32, i32, i32
  }
  func.func @transform_1(%arg0: i32, %arg1: i32, %arg2: i32) -> (i32, i32, i32) {
    %c0_i32 = arith.constant 0 : i32
    %c0_i32_0 = arith.constant 0 : i32
    %c0_i32_1 = arith.constant 0 : i32
    return %arg0, %c0_i32, %c0_i32_0 : i32, i32, i32
  }
  func.func @transform_2(%arg0: i32, %arg1: i32, %arg2: i32) -> (i32, i32, i32, i32) {
    %c0_i32 = arith.constant 0 : i32
    %c0_i32_0 = arith.constant 0 : i32
    return %arg1, %arg0, %arg2, %c0_i32 : i32, i32, i32, i32
  }
}

</mosaic_0001>

<bundles_post_ra>
// kernel: squeeze.30
= control target key start
LH: loop header
LB: loop body
LE: loop exit
PB: predicated region body
PF: predicated region fallthrough
CT: control target
= control target key end

     0   :  { %vm12_vm0 = vcmask 162816   ;;  %s139_s0 = inlined_call_operand.vmem [shape: f32[2,1,4,40], index: 0, kind: input, shape index: {}]   ;;  %s140_s1 = inlined_call_operand.vmem [shape: f32[2,4,2,20], index: 1, kind: output, shape index: {}]  }
   0x1   :  { %v89_v0 = vld [vmem:[%s139_s0 + $0x4] sm:$0xf]  ;;  %v9_v1 = vld [vmem:[%s139_s0] sm:$0xf]  ;;  %s98_s0 = smov 108  }
   0x2   :  { %8 = vst [vmem:[#allocation1 + $0x8] sm:$0xf] %v89_v0  ;;  %10 = vst [vmem:[#allocation1] sm:$0xf] %v9_v1 }
   0x9   :  { %v11_v2 = vld [vmem:[#allocation1] sm:$0xf]   ;;  %v15_v3 = vld [vmem:[#allocation1 + $0x8] sm:$0xf]  }
   0xa   :  { %v19_v4 = vld.sshfl [vmem:[#allocation1] sm:$0xff pattern:$0xba983210]   ;;  %13 = vst.msk [vmem:[#allocation0] ss:$8 sm:$0xf] %vm12_vm0, %v11_v2  }
   0xb   :  { %18 = vst.msk [vmem:[#allocation0 + $0x20] ss:$8 sm:$0xf] %vm12_vm0, %v15_v3   ;;  %20 = vrot.lane.b32.xlu0 %v19_v4, %s98_s0 }
  0x7d   :  { %v21_v5 = vpop.permute.xlu0 %20  }
  0x7e   :  { %24 = vst.msk [vmem:[#allocation0 + $0x1] ss:$8 sm:$0xf] %vm12_vm0, %v21_v5   ;;  %26 = vst.msk [vmem:[#allocation0 + $0x1] ss:$8 sm:$0xf0] %vm12_vm0, %v21_v5  }
  0x85   :  { %v31_v6 = vld [vmem:[#allocation0] sm:$0x3]  ;;  %v36_v7 = vld [vmem:[#allocation0 + $0x8] sm:$0x3]  ;;  %v42_v8 = vld [vmem:[#allocation0 + $0x10] sm:$0x3] }
  0x86   :  { %34 = vst [vmem:[%s140_s1] sm:$0x3] %v31_v6  ;;  %90 = vst [vmem:[%s140_s1 + $0x2] sm:$0x3] %v36_v7  ;;  %v49_v9 = vld [vmem:[#allocation0 + $0x18] sm:$0x3] }
  0x87   :  { %91 = vst [vmem:[%s140_s1 + $0x4] sm:$0x3] %v42_v8  ;;  %v56_v10 = vld [vmem:[#allocation0 + $0x20] sm:$0x3]  ;;  %v63_v11 = vld [vmem:[#allocation0 + $0x28] sm:$0x3] }
  0x88   :  { %92 = vst [vmem:[%s140_s1 + $0x6] sm:$0x3] %v49_v9  ;;  %93 = vst [vmem:[%s140_s1 + $0x8] sm:$0x3] %v56_v10  ;;  %v70_v12 = vld [vmem:[#allocation0 + $0x30] sm:$0x3] }
  0x89   :  { %94 = vst [vmem:[%s140_s1 + $0xa] sm:$0x3] %v63_v11  ;;  %v77_v13 = vld [vmem:[#allocation0 + $0x38] sm:$0x3]  ;;  %95 = vst [vmem:[%s140_s1 + $0xc] sm:$0x3] %v70_v12 }
  0x8a   :  { %96 = vst [vmem:[%s140_s1 + $0xe] sm:$0x3] %v77_v13 }

// kernel: _lambda_.1
= control target key start
LH: loop header
LB: loop body
LE: loop exit
PB: predicated region body
PF: predicated region fallthrough
CT: control target
= control target key end

     0   :  { %7 = vsyncpa [#allocation3], 0  ;;  %s943_s0 = inlined_call_operand.vmem [shape: f32[2,6,4,256], index: 0, kind: input, shape index: {}]   ;;  %s944_s1 = inlined_call_operand.hbm [shape: f32[6,256,256], index: 1, kind: input, shape index: {}]   ;;  %s945_s2 = inlined_call_operand.vmem [shape: f32[2,6,4,256], index: 2, kind: output, shape index: {}]  }
   0x1   :  { %9 = vsyncpa [#allocation3 + $0x1], 0  ;;  %s744_s9 = smov 0   ;;  %s746_s10 = smov 0  }
   0x2   :  { %s748_s11 = smov 0   ;;  %s750_s12 = smov 0  }
   0x3   :  { %s752_s13 = smov 0   ;;  %s754_s14 = smov 0  }
   0x4   :  { %s756_s15 = smov 0   ;;  %s758_s16 = smov 0  }
   0x5 LB: > { %s539_s17 = sadd.s32 4294967295, %s724_s16   ;;  %s30_s18 = sadd.s32 1, %s716_s14  ;;  %s724_s16 = sphi %s758_s16, %s15_s16   ;;  %s720_s15 = sphi %s756_s15, %s955_s15   ;;  %s716_s14 = sphi %s754_s14, %s954_s14   ;;  %s712_s13 = sphi %s752_s13, %s953_s13   ;;  %s708_s12 = sphi %s750_s12, %s952_s12   ;;  %s704_s11 = sphi %s748_s11, %s951_s11   ;;  %s700_s10 = sphi %s746_s10, %s950_s10   ;;  %s696_s9 = sphi %s744_s9, %s949_s9  }
   0x6   : > { %p32_p0 = scmp.ge.s32.totalorder %s30_s18, 2  ;;  %s34_s19 = sadd.s32 1, %s720_s15 }
   0x7   : > { %s71_s20 = sadd.s32 1, %s704_s11  ;;  %p78_p1 = scmp.ne.s32.totalorder %s704_s11, %s700_s10 }
   0x8   : > { %s957_s18 = smov (%p32_p0, %s30_s18), 0  ;;  %s959_s19 = smov (!%p32_p0, %s34_s19), %s720_s15 }
   0x9   : > { %p79_p2 = scmp.eq.s32.totalorder %s724_s16, 0  ;;  %p84_p3 = scmp.ne.s32.totalorder %s700_s10, %s696_s9 }
   0xa   : > { %p36_p4 = scmp.ge.s32.totalorder %s959_s19, 6  ;;  %p85_p5 = scmp.eq.s32.totalorder %s539_s17, 0 }
   0xb   : > { %p793_p6 = por %p79_p2, %p78_p1  ;;  %p562_p8 = scmp.lt.s32.totalorder %s724_s16, 12 }
   0xc   : > { %s961_s19 = smov (%p36_p4, %s959_s19), 0  ;;  %p799_p7 = por %p85_p5, %p84_p3 }
   0xd   : > { %s68_s23 = ssub.s32 %s720_s15, %s961_s19  ;;  %s154_s24 = sand.u32 1, %s704_s11  }
   0xe   : > { %p69_p9 = scmp.eq.s32.totalorder %s68_s23, 0  ;;  %s543_s25 = sshll.u32 %s154_s24, 9 }
   0xf   : > { %s554_s26 = sshll.u32 %s720_s15, 13  ;;  %s158_s3 = scalar_lea.vmem [#allocation2], %s543_s25 }
  0x10   : > { %s809_s27 = scalar_select %p69_p9, %s704_s11, %s71_s20  }
  0x11   : > { %s164_s30 = scalar_lea.hbm %s944_s1, %s554_s26  ;;  %s165_s4 = sshll.u32 %s158_s3, 4  ;;  %s166_s4 = int_to_ptr.vmem [resolvable:$true] %s165_s4 }
  0x12   : > { %p816_p10 = pnand %p562_p8, %p793_p6  ;;  %s155_s6 = scalar_lea.sflag [#allocation3], %s154_s24 }
  0x13   : > { %s643_s7 = scalar_lea.vmem %s166_s4, 8192  ;;  %s726_s8 = smov [#allocation2]  }
  0x14   : > { %p632_p11 = pneg %p816_p10  ;;  %p644_p12 = scmp.ne.s32.totalorder %s166_s4, %s643_s7 }
  0x15   : > { %s648_s9 = sshll.u32 %s726_s8, 4  ;;  %s649_s9 = int_to_ptr.vmem [resolvable:$false] %s648_s9 }
  0x16   : > { %p646_p13 = pnand %p644_p12, %p632_p11  ;;  %s650_s17 = scalar_lea.vmem %s649_s9, 16384 }
  0x17   : > { %p651_p1 = scmp.lt.s32.totalorder %s166_s4, %s649_s9  ;;  %p652_p2 = scmp.lt.s32.totalorder %s650_s17, %s643_s7 }
  0x18   : > { %p647_p0 = pneg %p646_p13 }
  0x19   : > { %p653_p3 = por %p652_p2, %p651_p1 }
  0x1b   : > { %p654_p4 = pnand %p653_p3, %p647_p0 }
  0x1d   : > { %657 = shalt.err (!%p654_p4)
}
  0x1e   : > { %s727_s20 = smov 256   ;;  %s728_s21 = smov 16  }
  0x1f   : > { %561 = dma.hbm_to_vmem [thread:$0]  (!%p816_p10), %s164_s30, 8192, %s166_s4, %s155_s6, %s727_s20, %s727_s20, %s728_s21  }
  0x20   : > { %p546_p5 = scmp.ge.s32.totalorder %s724_s16, 1  ;;  %p173_p6 = scmp.lt.s32.totalorder %s724_s16, 13 }
  0x22   : > { %p174_p8 = pnand %p546_p5, %p173_p6 }
  0x23   : > { %s179_s23 = sand.u32 (!%p174_p8), 1, %s700_s10  }
  0x24   : > { %177 = sbr.rel (%p174_p8) target bundleno = 305 (0x131), region = 28  ;;  %s547_s24 = sshll.u32 (!%p174_p8), %s179_s23, 9 }
  0x25   : > { %s180_s25 = scalar_lea.sflag (!%p174_p8), [#allocation3], %s179_s23  ;;  %s827_s26 = scalar_lea.vmem (!%p174_p8), [#allocation2], %s547_s24 }
  0x29   : > { %691 = dma.done.wait (%p799_p7), %s180_s25, 8192  }
  0x2a   : > { %693 = vsyncadd (%p799_p7), %s180_s25, 4294959104  ;;  %v283_v0 = vld [vmem:[%s827_s26 + $0xf8] sm:$0xff]  ;;  %v282_v1 = vld [vmem:[%s827_s26 + $0xf0] sm:$0xff]  ;;  %p225_p9 = scmp.lt.s32.totalorder %s708_s12, 1  ;;  %p227_p7 = scmp.lt.s32.totalorder %s712_s13, 5 }
  0x2b   : > { %v281_v2 = vld [vmem:[%s827_s26 + $0xe8] sm:$0xff]  ;;  %319 = vmatprep.subr.mxu0 %v283_v0  ;;  %v280_v3 = vld [vmem:[%s827_s26 + $0xe0] sm:$0xff]  ;;  %v279_v4 = vld [vmem:[%s827_s26 + $0xd8] sm:$0xff] }
  0x2c   : > { %320 = vmatpush1.msra.mxu0 %v282_v1  ;;  %v278_v5 = vld [vmem:[%s827_s26 + $0xd0] sm:$0xff]  ;;  %v277_v6 = vld [vmem:[%s827_s26 + $0xc8] sm:$0xff]  ;;  %s963_s12 = smov (!%p225_p9, %s708_s12), 1  ;;  %v276_v7 = vld [vmem:[%s827_s26 + $0xc0] sm:$0xff]  ;;  %s965_s13 = smov (!%p227_p7, %s712_s13), 5 }
  0x2d   : > { %321 = vmatprep.subr.mxu0 %v281_v2  ;;  %v275_v8 = vld [vmem:[%s827_s26 + $0xb8] sm:$0xff]  ;;  %v274_v9 = vld [vmem:[%s827_s26 + $0xb0] sm:$0xff]  ;;  %v273_v10 = vld [vmem:[%s827_s26 + $0xa8] sm:$0xff]  ;;  %s555_s22 = smul.u32 12, %s963_s12  ;;  %s548_s28 = sshll.u32 %s965_s13, 1 }
  0x2e   : > { %322 = vmatpush1.msra.mxu0 %v280_v3  ;;  %v272_v11 = vld [vmem:[%s827_s26 + $0xa0] sm:$0xff]  ;;  %v271_v12 = vld [vmem:[%s827_s26 + $0x98] sm:$0xff]  ;;  %v270_v13 = vld [vmem:[%s827_s26 + $0x90] sm:$0xff] }
  0x2f   : > { %323 = vmatprep.subr.mxu0 %v279_v4  ;;  %v269_v14 = vld [vmem:[%s827_s26 + $0x88] sm:$0xff]  ;;  %s852_s29 = sadd.s32 %s555_s22, %s548_s28  ;;  %v268_v15 = vld [vmem:[%s827_s26 + $0x80] sm:$0xff]  ;;  %v267_v16 = vld [vmem:[%s827_s26 + $0x78] sm:$0xff] }
  0x30   : > { %324 = vmatpush1.msra.mxu0 %v278_v5  ;;  %v266_v17 = vld [vmem:[%s827_s26 + $0x70] sm:$0xff]  ;;  %s549_s12 = sshll.u32 %s852_s29, 2  ;;  %v265_v18 = vld [vmem:[%s827_s26 + $0x68] sm:$0xff]  ;;  %v264_v19 = vld [vmem:[%s827_s26 + $0x60] sm:$0xff] }
  0x31   : > { %325 = vmatprep.subr.mxu0 %v277_v6  ;;  %v263_v20 = vld [vmem:[%s827_s26 + $0x58] sm:$0xff]  ;;  %s237_s3 = scalar_lea.vmem %s943_s0, %s549_s12  ;;  %v262_v21 = vld [vmem:[%s827_s26 + $0x50] sm:$0xff]  ;;  %v261_v22 = vld [vmem:[%s827_s26 + $0x48] sm:$0xff]  ;;  %s250_s6 = scalar_lea.vmem %s945_s2, %s549_s12 }
  0x32   : > { %326 = vmatpush1.msra.mxu0 %v276_v7  ;;  %v260_v23 = vld [vmem:[%s827_s26 + $0x40] sm:$0xff]  ;;  %v259_v25 = vld [vmem:[%s827_s26 + $0x38] sm:$0xff]  ;;  %v258_v27 = vld [vmem:[%s827_s26 + $0x30] sm:$0xff] }
  0x33   : > { %327 = vmatprep.subr.mxu0 %v275_v8  ;;  %v869_v24 = vld [vmem:[%s237_s3] sm:$0xff]  ;;  %v257_v28 = vld [vmem:[%s827_s26 + $0x28] sm:$0xff]  ;;  %v255_v30 = vld [vmem:[%s827_s26 + $0x18] sm:$0xff] }
  0x34   : > { %328 = vmatpush1.msra.mxu0 %v274_v9  ;;  %v317_v26 = vcombine.high %v869_v24, %v869_v24  ;;  %v256_v29 = vld [vmem:[%s827_s26 + $0x20] sm:$0xff]  ;;  %v254_v31 = vld [vmem:[%s827_s26 + $0x10] sm:$0xff]  ;;  %v253_v32 = vld [vmem:[%s827_s26 + $0x8] sm:$0xff] }
  0x35   : > { %329 = vmatprep.subr.mxu0 %v273_v10  ;;  %v252_v33 = vld [vmem:[%s827_s26] sm:$0xff]  ;;  %v315_v34 = vld [vmem:[%s827_s26 + $0x1f8] sm:$0xff]  ;;  %v314_v35 = vld [vmem:[%s827_s26 + $0x1f0] sm:$0xff] }
  0x36   : > { %330 = vmatpush1.msra.mxu0 %v272_v11  ;;  %383 = vmatprep.mubr.f32.mxu0 %v317_v26  ;;  %v313_v36 = vld [vmem:[%s827_s26 + $0x1e8] sm:$0xff]  ;;  %v312_v37 = vld [vmem:[%s827_s26 + $0x1e0] sm:$0xff]  ;;  %v311_v38 = vld [vmem:[%s827_s26 + $0x1d8] sm:$0xff] }
  0x37   : > { %331 = vmatprep.subr.mxu0 %v271_v12  ;;  %v310_v39 = vld [vmem:[%s827_s26 + $0x1d0] sm:$0xff]  ;;  %v309_v40 = vld [vmem:[%s827_s26 + $0x1c8] sm:$0xff]  ;;  %v308_v41 = vld [vmem:[%s827_s26 + $0x1c0] sm:$0xff] }
  0x38   : > { %332 = vmatpush1.msra.mxu0 %v270_v13  ;;  %v307_v42 = vld [vmem:[%s827_s26 + $0x1b8] sm:$0xff]  ;;  %v306_v43 = vld [vmem:[%s827_s26 + $0x1b0] sm:$0xff]  ;;  %v305_v44 = vld [vmem:[%s827_s26 + $0x1a8] sm:$0xff] }
  0x39   : > { %333 = vmatprep.subr.mxu0 %v269_v14  ;;  %v304_v45 = vld [vmem:[%s827_s26 + $0x1a0] sm:$0xff]  ;;  %v303_v46 = vld [vmem:[%s827_s26 + $0x198] sm:$0xff]  ;;  %v302_v47 = vld [vmem:[%s827_s26 + $0x190] sm:$0xff] }
  0x3a   : > { %334 = vmatpush1.msra.mxu0 %v268_v15  ;;  %v301_v48 = vld [vmem:[%s827_s26 + $0x188] sm:$0xff]  ;;  %v300_v49 = vld [vmem:[%s827_s26 + $0x180] sm:$0xff]  ;;  %v299_v50 = vld [vmem:[%s827_s26 + $0x178] sm:$0xff] }
  0x3b   : > { %335 = vmatprep.subr.mxu0 %v267_v16  ;;  %v298_v51 = vld [vmem:[%s827_s26 + $0x170] sm:$0xff]  ;;  %v297_v52 = vld [vmem:[%s827_s26 + $0x168] sm:$0xff]  ;;  %v296_v53 = vld [vmem:[%s827_s26 + $0x160] sm:$0xff] }
  0x3c   : > { %336 = vmatpush1.msra.mxu0 %v266_v17  ;;  %v295_v54 = vld [vmem:[%s827_s26 + $0x158] sm:$0xff]  ;;  %v294_v55 = vld [vmem:[%s827_s26 + $0x150] sm:$0xff]  ;;  %v293_v56 = vld [vmem:[%s827_s26 + $0x148] sm:$0xff] }
  0x3d   : > { %337 = vmatprep.subr.mxu0 %v265_v18  ;;  %v292_v57 = vld [vmem:[%s827_s26 + $0x140] sm:$0xff]  ;;  %v291_v58 = vld [vmem:[%s827_s26 + $0x138] sm:$0xff]  ;;  %v290_v59 = vld [vmem:[%s827_s26 + $0x130] sm:$0xff] }
  0x3e   : > { %338 = vmatpush1.msra.mxu0 %v264_v19  ;;  %v289_v60 = vld [vmem:[%s827_s26 + $0x128] sm:$0xff]  ;;  %v288_v61 = vld [vmem:[%s827_s26 + $0x120] sm:$0xff]  ;;  %v287_v62 = vld [vmem:[%s827_s26 + $0x118] sm:$0xff] }
  0x3f   : > { %339 = vmatprep.subr.mxu0 %v263_v20  ;;  %v286_v63 = vld [vmem:[%s827_s26 + $0x110] sm:$0xff]  ;;  %v285_v0 = vld [vmem:[%s827_s26 + $0x108] sm:$0xff]  ;;  %v284_v1 = vld [vmem:[%s827_s26 + $0x100] sm:$0xff] }
  0x40   : > { %340 = vmatpush1.msra.mxu0 %v262_v21 }
  0x41   : > { %341 = vmatprep.subr.mxu0 %v261_v22 }
  0x42   : > { %342 = vmatpush1.msra.mxu0 %v260_v23 }
  0x43   : > { %343 = vmatprep.subr.mxu0 %v259_v25 }
  0x44   : > { %344 = vmatpush1.msra.mxu0 %v258_v27 }
  0x45   : > { %345 = vmatprep.subr.mxu0 %v257_v28 }
  0x46   : > { %346 = vmatpush1.msra.mxu0 %v256_v29 }
  0x47   : > { %347 = vmatprep.subr.mxu0 %v255_v30 }
  0x48   : > { %348 = vmatpush1.msra.mxu0 %v254_v31 }
  0x49   : > { %349 = vmatprep.subr.mxu0 %v253_v32 }
  0x4a   : > { %350 = vmatpush1.msra.mxu0 %v252_v33 }
  0x4b   : > { %351 = vmatprep.subr.mxu0 %v315_v34 }
  0x4c   : > { %352 = vmatpush2.msra.mxu0 %v314_v35 }
  0x4d   : > { %353 = vmatprep.subr.mxu0 %v313_v36 }
  0x4e   : > { %354 = vmatpush2.msra.mxu0 %v312_v37 }
  0x4f   : > { %355 = vmatprep.subr.mxu0 %v311_v38 }
  0x50   : > { %356 = vmatpush2.msra.mxu0 %v310_v39 }
  0x51   : > { %357 = vmatprep.subr.mxu0 %v309_v40 }
  0x52   : > { %358 = vmatpush2.msra.mxu0 %v308_v41 }
  0x53   : > { %359 = vmatprep.subr.mxu0 %v307_v42 }
  0x54   : > { %360 = vmatpush2.msra.mxu0 %v306_v43 }
  0x55   : > { %361 = vmatprep.subr.mxu0 %v305_v44 }
  0x56   : > { %362 = vmatpush2.msra.mxu0 %v304_v45 }
  0x57   : > { %363 = vmatprep.subr.mxu0 %v303_v46 }
  0x58   : > { %364 = vmatpush2.msra.mxu0 %v302_v47 }
  0x59   : > { %365 = vmatprep.subr.mxu0 %v301_v48 }
  0x5a   : > { %366 = vmatpush2.msra.mxu0 %v300_v49 }
  0x5b   : > { %367 = vmatprep.subr.mxu0 %v299_v50 }
  0x5c   : > { %368 = vmatpush2.msra.mxu0 %v298_v51 }
  0x5d   : > { %369 = vmatprep.subr.mxu0 %v297_v52 }
  0x5e   : > { %370 = vmatpush2.msra.mxu0 %v296_v53 }
  0x5f   : > { %371 = vmatprep.subr.mxu0 %v295_v54 }
  0x60   : > { %372 = vmatpush2.msra.mxu0 %v294_v55 }
  0x61   : > { %373 = vmatprep.subr.mxu0 %v293_v56 }
  0x62   : > { %374 = vmatpush2.msra.mxu0 %v292_v57 }
  0x63   : > { %375 = vmatprep.subr.mxu0 %v291_v58 }
  0x64   : > { %376 = vmatpush2.msra.mxu0 %v290_v59 }
  0x65   : > { %377 = vmatprep.subr.mxu0 %v289_v60 }
  0x66   : > { %378 = vmatpush2.msra.mxu0 %v288_v61 }
  0x67   : > { %379 = vmatprep.subr.mxu0 %v287_v62 }
  0x68   : > { %380 = vmatpush2.msra.mxu0 %v286_v63 }
  0x69   : > { %381 = vmatprep.subr.mxu0 %v285_v0 }
  0x6a   : > { %382 = vmatpush2.msra.mxu0 %v284_v1 }
  0x6b   : > { %384 = vmatmul.mubr.f32.vlgmr.msra.gmra.mxu0 %v869_v24 }
 0x12b   : > { %v385_v2 = vpop.f32.mrf.mxu0 }
 0x12d   : > { %v387_v3 = vpop.f32.mrf.mxu0 }
 0x12e   : > { %v392_v4 = vcombine.low %v385_v2, %v387_v3 }
 0x130   : > { %394 = vst [vmem:[%s250_s6] sm:$0xff] %v392_v4 }
 0x131 PF: > { %s15_s16 = sadd.s32 1, %s724_s16   ;;  %s949_s9 = smov %s700_s10 }
 0x132   : > { %p12_p10 = scmp.ge.s32.totalorder %s15_s16, 14   ;;  %s950_s10 = smov %s704_s11 }
 0x133   : > { %s951_s11 = smov %s809_s27  ;;  %s952_s12 = smov %s716_s14 }
 0x134   : > { %s953_s13 = smov %s720_s15  ;;  %s954_s14 = smov %s957_s18 }
 0x135   : > { %s955_s15 = smov %s961_s19  ;;  %14 = sbr.rel (!%p12_p10) target bundleno = 5 (0x5), region = 71 }
 0x13a   :  { %432 = vsyncpa [#allocation3], 1 }
 0x13b   :  { %434 = vsyncpa [#allocation3 + $0x1], 1 }

</bundles_post_ra>
